<compile_context>
chip_gen: v7x
topology: tpu7x:2x2x1
jax: 0.10.0
libtpu: 0.0.40
codegen_flags: <defaults>
</compile_context>

<pallas_src>
import jax
import jax.numpy as jnp
from jax.experimental import pallas as pl
from jax.experimental.pallas import tpu as pltpu

EPS = 1e-12  # matches torch.nn.functional.normalize default
LANE = 128


def _l2norm_kernel(x_ref, w_ref, o_ref):
    # x_ref: (BN, C, TILE_HW) block, w_ref: (C, 1) per-channel scale
    x = x_ref[...].astype(jnp.float32)                 # (BN, C, T)
    sq_sum = jnp.sum(x * x, axis=1, keepdims=True)     # (BN, 1, T)
    # rsqrt(max(||x||^2, eps^2)) == 1 / max(||x||, eps); 1e-24 is a normal f32.
    inv_norm = jax.lax.rsqrt(jnp.maximum(sq_sum, EPS * EPS))
    w = w_ref[...].astype(jnp.float32)                 # (C, 1)
    y = x * inv_norm * w[None, :, :]                   # VPU multiplies only
    o_ref[...] = y.astype(o_ref.dtype)


def l2norm_pallas(x_nchw, weight, *, tile_hw=512):
    """x_nchw: (N, C, H, W); weight: (C,). Returns (N, C, H, W)."""
    N, C, H, W = x_nchw.shape
    HW = H * W

    # Lane-dense spatial tile: a multiple of 128, capped at tile_hw.
    hw_pad128 = ((HW + LANE - 1) // LANE) * LANE
    t_hw = min(tile_hw, hw_pad128)
    hw_pad = ((HW + t_hw - 1) // t_hw) * t_hw

    x = x_nchw.reshape(N, C, HW)
    if hw_pad != HW:
        # Padded columns produce 0 * rsqrt(eps^2) = 0; sliced off below.
        x = jnp.pad(x, ((0, 0), (0, 0), (0, hw_pad - HW)))

    # Fold batch elements into one block when the per-step slab is tiny,
    # so each grid step moves a meaningful amount of data.
    itemsize = jnp.dtype(x_nchw.dtype).itemsize
    bn = 1
    for cand in range(N, 0, -1):
        if N % cand == 0 and cand * max(C, 8) * t_hw * itemsize <= (1 << 20):
            bn = cand
            break

    w = weight.reshape(C, 1).astype(jnp.float32)

    grid = (N // bn, hw_pad // t_hw)
    out = pl.pallas_call(
        _l2norm_kernel,
        out_shape=jax.ShapeDtypeStruct((N, C, hw_pad), x_nchw.dtype),
        grid_spec=pltpu.PrefetchScalarGridSpec(
            num_scalar_prefetch=0,
            grid=grid,
            in_specs=[
                pl.BlockSpec((bn, C, t_hw), lambda n, h: (n, 0, h)),
                pl.BlockSpec((C, 1), lambda n, h: (0, 0)),
            ],
            out_specs=pl.BlockSpec((bn, C, t_hw), lambda n, h: (n, 0, h)),
        ),
        compiler_params=pltpu.CompilerParams(
            dimension_semantics=("parallel", "parallel"),
            # Above the 16/32 MiB scoped defaults, below v7x's 64 MiB physical.
            vmem_limit_bytes=48 * 1024 * 1024,
        ),
    )(x, w)

    if hw_pad != HW:
        out = out[:, :, :HW]
    return out.reshape(N, C, H, W)


if __name__ == "__main__":
    # Module config: in_features = number of channels, scale = constant init
    N, C, H, W = 2, 4, 16, 16
    scale = 20.0

    key = jax.random.PRNGKey(0)
    x = jax.random.normal(key, (N, C, H, W), dtype=jnp.float32)

    # Deterministic parameter init: nn.init.constant(weight, scale)
    weight = jnp.full((C,), scale, dtype=jnp.float32)

    y = l2norm_pallas(x, weight)
    y = jax.block_until_ready(y)

    # Reference check in plain JAX (same math as F.normalize + scale)
    norm = jnp.maximum(jnp.sqrt(jnp.sum(x * x, axis=1, keepdims=True)), EPS)
    y_ref = weight[None, :, None, None] * (x / norm)
    assert y.shape == (N, C, H, W)
    assert jnp.allclose(y, y_ref, atol=1e-5, rtol=1e-5)

    print("KERNEL_OK")
</pallas_src>

<mosaic_0001>
module attributes {stable_mosaic.version = 11 : i64} {
  func.func @_l2norm_kernel(%arg0: i32, %arg1: i32, %arg2: memref<2x4x256xf32, #tpu.memory_space<vmem>>, %arg3: memref<4x1xf32, #tpu.memory_space<vmem>>, %arg4: memref<2x4x256xf32, #tpu.memory_space<vmem>>) attributes {dimension_semantics = [#tpu.dimension_semantics<parallel>, #tpu.dimension_semantics<parallel>], iteration_bounds = array<i64: 1, 1>, scalar_prefetch = 0 : i64, scratch_operands = 0 : i64, tpu.core_type = #tpu.core_type<tc>, window_params = [{transform_indices = @transform_0, window_bounds = array<i64: 2, 4, 256>}, {pipeline_mode = #tpu.pipeline_mode<synchronous>, transform_indices = @transform_1, window_bounds = array<i64: 4, 1>}, {transform_indices = @transform_2, window_bounds = array<i64: 2, 4, 256>}]} {
    %c0 = arith.constant 0 : index
    %c0_0 = arith.constant 0 : index
    %c0_1 = arith.constant 0 : index
    %0 = vector.load %arg2[%c0, %c0_0, %c0_1] : memref<2x4x256xf32, #tpu.memory_space<vmem>>, vector<2x4x256xf32>
    %1 = arith.mulf %0, %0 : vector<2x4x256xf32>
    %cst = arith.constant dense<0.000000e+00> : vector<2x256xf32>
    %2 = vector.multi_reduction <add>, %1, %cst [1] : vector<2x4x256xf32> to vector<2x256xf32>
    %3 = vector.shape_cast %2 : vector<2x256xf32> to vector<2x1x256xf32>
    %cst_2 = arith.constant 1.000000e-24 : f32
    %4 = vector.broadcast %cst_2 : f32 to vector<2x1x256xf32>
    %5 = arith.maximumf %3, %4 : vector<2x1x256xf32>
    %6 = math.rsqrt %5 : vector<2x1x256xf32>
    %c0_3 = arith.constant 0 : index
    %c0_4 = arith.constant 0 : index
    %7 = vector.load %arg3[%c0_3, %c0_4] : memref<4x1xf32, #tpu.memory_space<vmem>>, vector<4x1xf32>
    %8 = vector.broadcast %6 : vector<2x1x256xf32> to vector<2x4x256xf32>
    %9 = arith.mulf %0, %8 : vector<2x4x256xf32>
    %10 = vector.shape_cast %7 : vector<4x1xf32> to vector<1x4x1xf32>
    %11 = vector.broadcast %10 : vector<1x4x1xf32> to vector<2x4x256xf32>
    %12 = arith.mulf %9, %11 : vector<2x4x256xf32>
    %c0_5 = arith.constant 0 : index
    %c0_6 = arith.constant 0 : index
    %c0_7 = arith.constant 0 : index
    %13 = vector.load %arg4[%c0_5, %c0_6, %c0_7] : memref<2x4x256xf32, #tpu.memory_space<vmem>>, vector<2x4x256xf32>
    tpu.vector_store %arg4[%c0_5, %c0_6, %c0_7], %12 {strides = array<i32>} : memref<2x4x256xf32, #tpu.memory_space<vmem>>, vector<2x4x256xf32>,
    return
  }
  func.func @transform_0(%arg0: i32, %arg1: i32) -> (i32, i32, i32) {
    %c0_i32 = arith.constant 0 : i32
    %c0_i32_0 = arith.constant 0 : i32
    return %arg0, %c0_i32, %arg1 : i32, i32, i32
  }
  func.func @transform_1(%arg0: i32, %arg1: i32) -> (i32, i32) {
    %c0_i32 = arith.constant 0 : i32
    %c0_i32_0 = arith.constant 0 : i32
    %c0_i32_1 = arith.constant 0 : i32
    return %c0_i32, %c0_i32_0 : i32, i32
  }
  func.func @transform_2(%arg0: i32, %arg1: i32) -> (i32, i32, i32) {
    %c0_i32 = arith.constant 0 : i32
    %c0_i32_0 = arith.constant 0 : i32
    return %arg0, %c0_i32, %arg1 : i32, i32, i32
  }
}

</mosaic_0001>

<bundles_post_ra>
// kernel: tpu_custom_call.1
= control target key start
LH: loop header
LB: loop body
LE: loop exit
PB: predicated region body
PF: predicated region fallthrough
CT: control target
= control target key end

     0   :  { %7 = vsyncpa [#allocation3], 0  ;;  %s234_s0 = inlined_call_operand.hbm [shape: f32[2,4,256], index: 0, kind: input, shape index: {}]   ;;  %s235_s1 = inlined_call_operand.vmem [shape: f32[4,1], index: 1, kind: input, shape index: {}]   ;;  %s236_s2 = inlined_call_operand.hbm [shape: f32[2,4,256], index: 2, kind: output, shape index: {}]  }
   0x1   :  { %8 = vsyncpa [#allocation4], 0  ;;  %s180_s9 = smov [#allocation2]   ;;  %s132_s13 = scalar_lea.hbm %s234_s0, 256 }
   0x2   :  { %s14_s10 = sshll.u32 %s180_s9, 4  ;;  %p133_p0 = scmp.ne.s32.totalorder %s234_s0, %s132_s13  ;;  %s15_s10 = int_to_ptr.vmem [resolvable:$true] %s14_s10 }
   0x3   :  { %p136_p1 = scmp.lt.u32.totalorder %s132_s13, %s234_s0 }
   0x5   :  { %p138_p2 = pnand %p136_p1, %p133_p0 }
   0x7   :  { %141 = shalt.err (!%p138_p2)
}
   0x8   :  { %s142_s18 = scalar_lea.vmem %s15_s10, 256  ;;  %p147_p4 = scmp.lt.s32.totalorder %s15_s10, %s15_s10 }
   0x9   :  { %p143_p3 = scmp.ne.s32.totalorder %s15_s10, %s142_s18  ;;  %p148_p5 = scmp.lt.s32.totalorder %s142_s18, %s142_s18 }
   0xb   :  { %p149_p6 = por %p148_p5, %p147_p4 }
   0xd   :  { %p150_p7 = pnand %p149_p6, %p143_p3 }
   0xf   :  { %153 = shalt.err (!%p150_p7)
}
  0x10   :  { %s181_s19 = smov 128   ;;  %s182_s20 = smov 8  }
  0x11   :  { %20 = dma.hbm_to_vmem [thread:$0]  %s234_s0, 256, %s15_s10, [#allocation3], %s181_s19, %s181_s19, %s182_s20  }
  0x12   :  { %176 = dma.done.wait [#allocation3], 256  }
  0x13   :  { %177 = vsyncadd [#allocation3], 4294967040  ;;  %v183_v0 = vmov 0   ;;  %v73_v1 = vld [vmem:[%s235_s1] sm:$0xf]  ;;  %v27_v3 = vld [vmem:[#allocation2 + $0x8] sm:$0xff]  ;;  %v91_v43 = vlaneseq }
  0x14   :  { %123 = vset.pattern.permute.xlu0 %v183_v0  ;;  %v26_v2 = vld [vmem:[#allocation2] sm:$0xff]  ;;  %v29_v5 = vmul.f32 %v27_v3, %v27_v3  ;;  %vm36_vm0 = vcmask 1043456   ;;  %v184_v41 = vmov 839922192   ;;  %s185_s0 = smov [#allocation5]  }
  0x15   :  { %86 = vperm.xlu0 %123, %v73_v1   ;;  %v28_v4 = vmul.f32 %v26_v2, %v26_v2  ;;  %v89_v42 = vunpack.c.l.s4 %v184_v41  ;;  %v92_v48 = vshrl.u32 %v91_v43, 7  ;;  %s105_s1 = sshll.u32 %s185_s0, 4  ;;  %s106_s1 = int_to_ptr.vmem [resolvable:$true] %s105_s1 }
  0x16   :  { %v33_v7 = vcombine.high %v29_v5, %v29_v5  ;;  %v51_v9 = vsel %vm36_vm0, %v29_v5, 0.0  ;;  %s154_s25 = scalar_lea.vmem %s106_s1, 256  ;;  %p159_p9 = scmp.lt.s32.totalorder %s106_s1, %s106_s1 }
  0x17   :  { %v32_v6 = vcombine.high %v28_v4, %v28_v4  ;;  %v37_v8 = vsel %vm36_vm0, %v28_v4, 0.0  ;;  %v52_v13 = vrot.slane %v51_v9, 4  ;;  %v90_v47 = vunpack.c.0.s8 %v89_v42  ;;  %p155_p8 = scmp.ne.s32.totalorder %s106_s1, %s154_s25  ;;  %p160_p10 = scmp.lt.s32.totalorder %s154_s25, %s154_s25 }
  0x18   :  { %v38_v11 = vrot.slane %v37_v8, 4  ;;  %v58_v12 = vsel %vm36_vm0, %v33_v7, 0.0 }
  0x19   :  { %v44_v10 = vsel %vm36_vm0, %v32_v6, 0.0  ;;  %v59_v15 = vrot.slane %v58_v12, 4  ;;  %v53_v17 = vadd.f32 %v52_v13, %v51_v9  ;;  %v93_v51 = vsub.s32 %v90_v47, %v92_v48  ;;  %p161_p11 = por %p160_p10, %p159_p9 }
  0x1a   :  { %v45_v14 = vrot.slane %v44_v10, 4  ;;  %v39_v16 = vadd.f32 %v38_v11, %v37_v8 }
  0x1b   :  { %v60_v19 = vadd.f32 %v59_v15, %v58_v12  ;;  %v54_v21 = vrot.slane %v53_v17, 2  ;;  %p162_p12 = pnand %p161_p11, %p155_p8 }
  0x1c   :  { %v46_v18 = vadd.f32 %v45_v14, %v44_v10  ;;  %v40_v20 = vrot.slane %v39_v16, 2 }
  0x1d   :  { %v61_v23 = vrot.slane %v60_v19, 2  ;;  %v55_v25 = vadd.f32 %v54_v21, %v53_v17 }
  0x1e   :  { %v47_v22 = vrot.slane %v46_v18, 2  ;;  %v41_v24 = vadd.f32 %v40_v20, %v39_v16 }
  0x1f   :  { %v62_v27 = vadd.f32 %v61_v23, %v60_v19  ;;  %v56_v29 = vrot.slane %v55_v25, 1 }
  0x20   :  { %v48_v26 = vadd.f32 %v47_v22, %v46_v18  ;;  %v42_v28 = vrot.slane %v41_v24, 1 }
  0x21   :  { %v63_v31 = vrot.slane %v62_v27, 1  ;;  %v57_v33 = vadd.f32 %v56_v29, %v55_v25 }
  0x22   :  { %v49_v30 = vrot.slane %v48_v26, 1  ;;  %v43_v32 = vadd.f32 %v42_v28, %v41_v24 }
  0x23   :  { %v64_v35 = vadd.f32 %v63_v31, %v62_v27  ;;  %v67_v37 = vmax.f32 %v57_v33, 1e-24 }
  0x24   :  { %v50_v34 = vadd.f32 %v49_v30, %v48_v26  ;;  %v65_v36 = vmax.f32 %v43_v32, 1e-24 }
  0x25   :  { %v68_v39 = vmax.f32 %v64_v35, 1e-24 }
  0x26   :  { %v66_v38 = vmax.f32 %v50_v34, 1e-24  ;;  %124 = vrsqrt.f32 %v65_v36 }
  0x27   :  { %126 = vrsqrt.f32 %v67_v37 }
  0x28   :  { %128 = vrsqrt.f32 %v66_v38 }
  0x29   :  { %130 = vrsqrt.f32 %v68_v39 }
  0x30   :  { %v125_v40 = vpop.eup %124 }
  0x31   :  { %v127_v44 = vpop.eup %126 }
  0x32   :  { %v129_v45 = vpop.eup %128 }
  0x33   :  { %v131_v46 = vpop.eup %130  ;;  %v78_v49 = vcombine.low %v125_v40, %v129_v45 }
  0x34   :  { %v79_v50 = vcombine.low %v127_v44, %v131_v46 }
  0x35   :  { %v82_v52 = vmul.f32 %v78_v49, %v26_v2 }
  0x36   :  { %v83_v53 = vmul.f32 %v79_v50, %v27_v3 }
  0x94   :  { %v87_v54 = vpop.permute.xlu0 %86 }
  0x95   :  { %v94_v55 = vrot.slane %v87_v54, %v93_v51 }
  0x97   :  { %v96_v56 = vmul.f32 %v94_v55, %v82_v52  ;;  %v97_v57 = vmul.f32 %v94_v55, %v83_v53 }
  0x99   :  { %98 = vst [vmem:[#allocation5] sm:$0xff] %v96_v56  ;;  %99 = vst [vmem:[#allocation5 + $0x8] sm:$0xff] %v97_v57 }
  0x9a   :  { %165 = shalt.err (!%p162_p12)
}
  0x9b   :  { %s166_s28 = scalar_lea.hbm %s236_s2, 256 }
  0x9c   :  { %p167_p13 = scmp.ne.s32.totalorder %s236_s2, %s166_s28  ;;  %p170_p0 = scmp.lt.u32.totalorder %s166_s28, %s236_s2 }
  0x9e   :  { %p172_p1 = pnand %p170_p0, %p167_p13 }
  0xa0   :  { %175 = shalt.err (!%p172_p1)
}
  0xa1   :  { %111 = dma.vmem_to_hbm [thread:$0]  %s106_s1, 256, %s236_s2, [#allocation4], %s181_s19, %s181_s19, %s182_s20  }
  0xa2   :  { %178 = dma.done.wait [#allocation4], 256  }
  0xa3   :  { %179 = vsyncadd [#allocation4], 4294967040 }
  0xa4   :  { %115 = vsyncpa [#allocation3], 1 }
  0xa5   :  { %116 = vsyncpa [#allocation4], 1 }

</bundles_post_ra>
